<compile_context>
chip_gen: v7x
topology: tpu7x:2x2x1
jax: 0.10.0
libtpu: 0.0.40
codegen_flags: <defaults>
</compile_context>

<pallas_src>
import jax
import jax.numpy as jnp
from jax.experimental import pallas as pl
from jax.experimental.pallas import tpu as pltpu


def sepconv_kernel(xc_ref, xt_ref, xb_ref, wf_ref, b_ref, o_ref, xp_ref):
    # xc_ref: (TH, W, C_in)      center rows of the input tile (batch squeezed)
    # xt_ref: (1,  W, C_in)      row just above the tile (ignored at top edge)
    # xb_ref: (1,  W, C_in)      row just below the tile (ignored at bottom edge)
    # wf_ref: (9, C_in, C_out)   fused depthwise*pointwise*BN weights, tap-major
    # b_ref:  (1, C_out)         fused pointwise + BN bias
    # o_ref:  (TH, W, C_out)     output tile
    # xp_ref: (TH+2, W+2, C_in)  VMEM scratch: zero-padded halo'd tile
    th, w, c_out = o_ref.shape
    c_in = xc_ref.shape[-1]
    t = pl.program_id(1)
    nt = pl.num_programs(1)

    # Assemble the "same"-padded tile in VMEM (no jnp.pad / halo copies in HBM).
    xp_ref[...] = jnp.zeros_like(xp_ref)
    xp_ref[1:th + 1, 1:w + 1, :] = xc_ref[...]

    @pl.when(t > 0)
    def _():  # real row above this tile
        xp_ref[0:1, 1:w + 1, :] = xt_ref[...]

    @pl.when(t < nt - 1)
    def _():  # real row below this tile
        xp_ref[th + 1:th + 2, 1:w + 1, :] = xb_ref[...]

    xp = xp_ref[...]
    wf = wf_ref[...]  # hoisted once per grid step: (9, C_in, C_out), f32

    # Fused depthwise(3x3) + pointwise(1x1) + BN as 9 accumulating MXU matmuls:
    #   acc += shift_k(x).reshape(TH*W, C_in) @ (diag(wd_k) @ wp_bn)
    acc = jnp.zeros((th * w, c_out), jnp.float32)
    for kh in range(3):
        for kw in range(3):
            xs = xp[kh:kh + th, kw:kw + w, :].reshape(th * w, c_in)
            acc = acc + jnp.dot(xs, wf[kh * 3 + kw],
                                preferred_element_type=jnp.float32)
    acc = acc + b_ref[...]  # (1, C_out) broadcast; BN shift already folded in
    o_ref[...] = acc.reshape(th, w, c_out).astype(o_ref.dtype)


def _vmem_limit_bytes():
    """Generation-aware pipeline VMEM budget (v7x has 64 MiB, v5e/v6e 128 MiB)."""
    phys = 128 * 1024 * 1024
    try:
        info = pltpu.get_tpu_info()
        phys = int(getattr(info, "vmem_capacity_bytes", phys))
    except Exception:
        pass
    return int(min(phys // 2, 48 * 1024 * 1024))


def _tile_bytes(th, W, C_in, C_out, in_isz, out_isz):
    """Per-step VMEM footprint: double-buffered blocks + scratch + f32 temps."""
    b = 2 * (th * W * C_in + 2 * W * C_in) * in_isz   # input blocks (x2 buffers)
    b += 2 * th * W * C_out * out_isz                 # output block (x2 buffers)
    b += (th + 2) * (W + 2) * C_in * in_isz           # padded-tile scratch
    b += (th + 2) * (W + 2) * C_in * 4                # loaded tile value
    b += th * W * (C_in + C_out) * 4                  # shifted slice + f32 acc
    b += (9 * C_in * C_out + C_out) * 4               # resident fused weights
    return b


def _pick_tile_h(N, H, W, C_in, C_out, in_isz, out_isz, budget):
    """Largest row-tile dividing H that fits the budget; keep >=2 grid steps."""
    divisors = [d for d in range(1, H + 1) if H % d == 0]
    fits = [d for d in divisors
            if _tile_bytes(d, W, C_in, C_out, in_isz, out_isz) <= budget]
    if not fits:
        fits = [divisors[0]]
    if N == 1:  # v7x megacore: keep both TensorCores fed (N * T >= 2)
        two_plus = [d for d in fits if H // d >= 2]
        if two_plus:
            fits = two_plus
    return max(fits)


def separable_conv_block_nhwc(x, dw_weight, pw_weight, pw_bias,
                              bn_gamma, bn_beta, bn_mean, bn_var,
                              eps=1e-3, tile_h=None):
    """Native NHWC entry point (no relayout passes).

    x:         (N, H, W, C_in)
    dw_weight: (C_in, 1, 3, 3)      depthwise conv weight (groups=C_in, no bias)
    pw_weight: (C_out, C_in, 1, 1)  pointwise conv weight
    pw_bias:   (C_out,)
    bn_*:      (C_out,)             BatchNorm2d affine + running stats
    returns:   (N, H, W, C_out)
    """
    N, H, W, C_in = x.shape
    C_out = pw_weight.shape[0]

    # Fold BN (running stats) and the depthwise taps into nine pointwise
    # weights: W_k[ci, co] = wd[ci, kh, kw] * wp[co, ci] * bn_scale[co].
    scale = bn_gamma / jnp.sqrt(bn_var + eps)                          # (C_out,)
    wp_eff = (pw_weight.reshape(C_out, C_in) * scale[:, None]).T       # (C_in, C_out)
    wd = dw_weight.reshape(C_in, 9)                                    # (C_in, 9)
    wf = (wd.T[:, :, None] * wp_eff[None, :, :]).astype(jnp.float32)   # (9, C_in, C_out)
    bp = ((pw_bias - bn_mean) * scale + bn_beta).reshape(1, C_out).astype(jnp.float32)

    vmem_limit = _vmem_limit_bytes()
    isz = jnp.dtype(x.dtype).itemsize
    if tile_h is None:
        tile_h = _pick_tile_h(N, H, W, C_in, C_out, isz, isz,
                              budget=(3 * vmem_limit) // 4)
    assert H % tile_h == 0, "tile_h must divide H"
    th = tile_h
    T = H // th

    out = pl.pallas_call(
        sepconv_kernel,
        out_shape=jax.ShapeDtypeStruct((N, H, W, C_out), x.dtype),
        grid_spec=pltpu.PrefetchScalarGridSpec(
            num_scalar_prefetch=0,
            grid=(N, T),
            in_specs=[
                # Center rows of the tile: rows [t*th, (t+1)*th).
                pl.BlockSpec((None, th, W, C_in), lambda n, t: (n, t, 0, 0)),
                # Single halo rows above/below (block size 1 -> element index),
                # clamped at the image border; overwritten only when valid.
                pl.BlockSpec((None, 1, W, C_in),
                             lambda n, t: (n, jnp.maximum(t * th - 1, 0), 0, 0)),
                pl.BlockSpec((None, 1, W, C_in),
                             lambda n, t: (n, jnp.minimum((t + 1) * th, H - 1), 0, 0)),
                # Fused weights / bias, resident across the whole grid.
                pl.BlockSpec((9, C_in, C_out), lambda n, t: (0, 0, 0)),
                pl.BlockSpec((1, C_out), lambda n, t: (0, 0)),
            ],
            out_specs=pl.BlockSpec((None, th, W, C_out), lambda n, t: (n, t, 0, 0)),
            scratch_shapes=[pltpu.VMEM((th + 2, W + 2, C_in), x.dtype)],
        ),
        compiler_params=pltpu.CompilerParams(
            dimension_semantics=("parallel", "parallel"),
            vmem_limit_bytes=vmem_limit,
        ),
    )(x, x, x, wf, bp)
    return out


def separable_conv_block(x_nchw, dw_weight, pw_weight, pw_bias,
                         bn_gamma, bn_beta, bn_mean, bn_var,
                         eps=1e-3, tile_h=None):
    """NCHW convenience wrapper matching the PyTorch module layout.

    The kernel is NHWC-native; prefer separable_conv_block_nhwc to avoid the
    two relayout passes below when the surrounding model keeps NHWC.
    """
    x = jnp.transpose(x_nchw, (0, 2, 3, 1))
    y = separable_conv_block_nhwc(x, dw_weight, pw_weight, pw_bias,
                                  bn_gamma, bn_beta, bn_mean, bn_var,
                                  eps=eps, tile_h=tile_h)
    return jnp.transpose(y, (0, 3, 1, 2))


def separable_conv_block_reference(x, dw_w, pw_w, pw_b,
                                   gamma, beta, mean, var, eps=1e-3):
    """Plain-JAX reference matching the PyTorch forward (eval-mode BN)."""
    C_in = x.shape[1]
    dw = jax.lax.conv_general_dilated(
        x, dw_w, window_strides=(1, 1), padding=((1, 1), (1, 1)),
        feature_group_count=C_in,
        dimension_numbers=("NCHW", "OIHW", "NCHW"),
        precision=jax.lax.Precision.HIGHEST)
    pw = jax.lax.conv_general_dilated(
        dw, pw_w, window_strides=(1, 1), padding="VALID",
        dimension_numbers=("NCHW", "OIHW", "NCHW"),
        precision=jax.lax.Precision.HIGHEST)
    pw = pw + pw_b.reshape(1, -1, 1, 1)
    scale = (gamma / jnp.sqrt(var + eps)).reshape(1, -1, 1, 1)
    return (pw - mean.reshape(1, -1, 1, 1)) * scale + beta.reshape(1, -1, 1, 1)


if __name__ == "__main__":
    key = jax.random.PRNGKey(0)
    kx, kdw, kpw, kpb, kg, kb, km, kv = jax.random.split(key, 8)

    N, C_in, C_out, H, W = 2, 4, 8, 16, 16

    x = jax.random.normal(kx, (N, C_in, H, W), dtype=jnp.float32)
    dw_weight = jax.random.normal(kdw, (C_in, 1, 3, 3), dtype=jnp.float32) * 0.2
    pw_weight = jax.random.normal(kpw, (C_out, C_in, 1, 1), dtype=jnp.float32) * 0.2
    pw_bias = jax.random.normal(kpb, (C_out,), dtype=jnp.float32) * 0.1
    bn_gamma = 1.0 + 0.1 * jax.random.normal(kg, (C_out,), dtype=jnp.float32)
    bn_beta = 0.1 * jax.random.normal(kb, (C_out,), dtype=jnp.float32)
    bn_mean = 0.1 * jax.random.normal(km, (C_out,), dtype=jnp.float32)
    bn_var = jnp.abs(jax.random.normal(kv, (C_out,), dtype=jnp.float32)) + 0.5

    ref = separable_conv_block_reference(x, dw_weight, pw_weight, pw_bias,
                                         bn_gamma, bn_beta, bn_mean, bn_var,
                                         eps=1e-3)

    # Tiled path (tile_h=8 -> T=2): exercises the in-kernel halo / padding logic.
    out = separable_conv_block(x, dw_weight, pw_weight, pw_bias,
                               bn_gamma, bn_beta, bn_mean, bn_var,
                               eps=1e-3, tile_h=8)
    out = jax.block_until_ready(out)
    assert out.shape == (N, C_out, H, W)
    assert jnp.allclose(out, ref, atol=1e-4, rtol=1e-4), "tiled mismatch vs reference"

    # Auto-tiled path (generation-aware VMEM budget picks the largest row tile).
    out_auto = separable_conv_block(x, dw_weight, pw_weight, pw_bias,
                                    bn_gamma, bn_beta, bn_mean, bn_var, eps=1e-3)
    out_auto = jax.block_until_ready(out_auto)
    assert jnp.allclose(out_auto, ref, atol=1e-4, rtol=1e-4), "auto-tile mismatch vs reference"

    print("KERNEL_OK")
</pallas_src>

<mosaic_0001>
module attributes {stable_mosaic.version = 11 : i64} {
  func.func @sepconv_kernel(%arg0: i32, %arg1: i32, %arg2: memref<1x8x16x4xf32, #tpu.memory_space<vmem>>, %arg3: memref<1x1x16x4xf32, #tpu.memory_space<vmem>>, %arg4: memref<1x1x16x4xf32, #tpu.memory_space<vmem>>, %arg5: memref<9x4x8xf32, #tpu.memory_space<vmem>>, %arg6: memref<1x8xf32, #tpu.memory_space<vmem>>, %arg7: memref<1x8x16x8xf32, #tpu.memory_space<vmem>>, %arg8: memref<10x18x4xf32, #tpu.memory_space<vmem>>) attributes {dimension_semantics = [#tpu.dimension_semantics<parallel>, #tpu.dimension_semantics<parallel>], iteration_bounds = array<i64: 2, 2>, scalar_prefetch = 0 : i64, scratch_operands = 1 : i64, tpu.core_type = #tpu.core_type<tc>, window_params = [{transform_indices = @transform_0, window_bounds = array<i64: 1, 8, 16, 4>}, {transform_indices = @transform_1, window_bounds = array<i64: 1, 1, 16, 4>}, {transform_indices = @transform_2, window_bounds = array<i64: 1, 1, 16, 4>}, {pipeline_mode = #tpu.pipeline_mode<synchronous>, transform_indices = @transform_3, window_bounds = array<i64: 9, 4, 8>}, {pipeline_mode = #tpu.pipeline_mode<synchronous>, transform_indices = @transform_4, window_bounds = array<i64: 1, 8>}, {transform_indices = @transform_5, window_bounds = array<i64: 1, 8, 16, 8>}]} {
    %cst = arith.constant 0.000000e+00 : f32
    %0 = vector.broadcast %cst : f32 to vector<10x18x4xf32>
    %c0 = arith.constant 0 : index
    %c0_0 = arith.constant 0 : index
    %c0_1 = arith.constant 0 : index
    %1 = vector.load %arg8[%c0, %c0_0, %c0_1] : memref<10x18x4xf32, #tpu.memory_space<vmem>>, vector<10x18x4xf32>
    tpu.vector_store %arg8[%c0, %c0_0, %c0_1], %0 {strides = array<i32>} : memref<10x18x4xf32, #tpu.memory_space<vmem>>, vector<10x18x4xf32>,
    %c0_2 = arith.constant 0 : index
    %c0_3 = arith.constant 0 : index
    %c0_4 = arith.constant 0 : index
    %c0_5 = arith.constant 0 : index
    %2 = vector.load %arg2[%c0_2, %c0_3, %c0_4, %c0_5] : memref<1x8x16x4xf32, #tpu.memory_space<vmem>>, vector<1x8x16x4xf32>
    %3 = vector.shape_cast %2 : vector<1x8x16x4xf32> to vector<8x16x4xf32>
    %c1 = arith.constant 1 : index
    %c1_6 = arith.constant 1 : index
    %c0_7 = arith.constant 0 : index
    %4 = vector.load %arg8[%c1, %c1_6, %c0_7] : memref<10x18x4xf32, #tpu.memory_space<vmem>>, vector<8x16x4xf32>
    tpu.vector_store %arg8[%c1, %c1_6, %c0_7], %3 {strides = array<i32>} : memref<10x18x4xf32, #tpu.memory_space<vmem>>, vector<8x16x4xf32>,
    %c0_i32 = arith.constant 0 : i32
    %5 = arith.cmpi sgt, %arg1, %c0_i32 : i32
    %6 = arith.extui %5 : i1 to i32
    %c0_i32_8 = arith.constant 0 : i32
    %7 = arith.cmpi ne, %6, %c0_i32_8 : i32
    scf.if %7 {
      %c0_32 = arith.constant 0 : index
      %c0_33 = arith.constant 0 : index
      %c0_34 = arith.constant 0 : index
      %c0_35 = arith.constant 0 : index
      %75 = vector.load %arg3[%c0_32, %c0_33, %c0_34, %c0_35] : memref<1x1x16x4xf32, #tpu.memory_space<vmem>>, vector<1x1x16x4xf32>
      %76 = vector.shape_cast %75 : vector<1x1x16x4xf32> to vector<1x16x4xf32>
      %c0_36 = arith.constant 0 : index
      %c1_37 = arith.constant 1 : index
      %c0_38 = arith.constant 0 : index
      %77 = vector.load %arg8[%c0_36, %c1_37, %c0_38] : memref<10x18x4xf32, #tpu.memory_space<vmem>>, vector<1x16x4xf32>
      tpu.vector_store %arg8[%c0_36, %c1_37, %c0_38], %76 {strides = array<i32>} : memref<10x18x4xf32, #tpu.memory_space<vmem>>, vector<1x16x4xf32>,
    } else {
    }
    %c1_i32 = arith.constant 1 : i32
    %8 = arith.cmpi slt, %arg1, %c1_i32 : i32
    %9 = arith.extui %8 : i1 to i32
    %c0_i32_9 = arith.constant 0 : i32
    %10 = arith.cmpi ne, %9, %c0_i32_9 : i32
    scf.if %10 {
      %c0_32 = arith.constant 0 : index
      %c0_33 = arith.constant 0 : index
      %c0_34 = arith.constant 0 : index
      %c0_35 = arith.constant 0 : index
      %75 = vector.load %arg4[%c0_32, %c0_33, %c0_34, %c0_35] : memref<1x1x16x4xf32, #tpu.memory_space<vmem>>, vector<1x1x16x4xf32>
      %76 = vector.shape_cast %75 : vector<1x1x16x4xf32> to vector<1x16x4xf32>
      %c9 = arith.constant 9 : index
      %c1_36 = arith.constant 1 : index
      %c0_37 = arith.constant 0 : index
      %77 = vector.load %arg8[%c9, %c1_36, %c0_37] : memref<10x18x4xf32, #tpu.memory_space<vmem>>, vector<1x16x4xf32>
      tpu.vector_store %arg8[%c9, %c1_36, %c0_37], %76 {strides = array<i32>} : memref<10x18x4xf32, #tpu.memory_space<vmem>>, vector<1x16x4xf32>,
    } else {
    }
    %c0_10 = arith.constant 0 : index
    %c0_11 = arith.constant 0 : index
    %c0_12 = arith.constant 0 : index
    %11 = vector.load %arg8[%c0_10, %c0_11, %c0_12] : memref<10x18x4xf32, #tpu.memory_space<vmem>>, vector<10x18x4xf32>
    %c0_13 = arith.constant 0 : index
    %c0_14 = arith.constant 0 : index
    %c0_15 = arith.constant 0 : index
    %12 = vector.load %arg5[%c0_13, %c0_14, %c0_15] : memref<9x4x8xf32, #tpu.memory_space<vmem>>, vector<9x4x8xf32>
    %cst_16 = arith.constant 0.000000e+00 : f32
    %13 = vector.broadcast %cst_16 : f32 to vector<128x8xf32>
    %14 = vector.extract_strided_slice %11 {offsets = [0, 0, 0], sizes = [8, 16, 4], strides = [1, 1, 1]} : vector<10x18x4xf32> to vector<8x16x4xf32>
    %15 = vector.shape_cast %14 : vector<8x16x4xf32> to vector<128x4xf32>
    %16 = vector.extract_strided_slice %12 {offsets = [0, 0, 0], sizes = [1, 4, 8], strides = [1, 1, 1]} : vector<9x4x8xf32> to vector<1x4x8xf32>
    %17 = vector.shape_cast %16 : vector<1x4x8xf32> to vector<4x8xf32>
    %cst_17 = arith.constant dense<0.000000e+00> : vector<128x8xf32>
    %18 = tpu.matmul %15, %17, %cst_17 {dimension_numbers = #tpu.dot_dimension_numbers<[1], [0], [0], [1], [0, 0, 1, 1], [], []>} : vector<128x4xf32>, vector<4x8xf32>, vector<128x8xf32> -> vector<128x8xf32>
    %19 = arith.addf %13, %18 : vector<128x8xf32>
    %20 = vector.extract_strided_slice %11 {offsets = [0, 1, 0], sizes = [8, 16, 4], strides = [1, 1, 1]} : vector<10x18x4xf32> to vector<8x16x4xf32>
    %21 = vector.shape_cast %20 : vector<8x16x4xf32> to vector<128x4xf32>
    %22 = vector.extract_strided_slice %12 {offsets = [1, 0, 0], sizes = [1, 4, 8], strides = [1, 1, 1]} : vector<9x4x8xf32> to vector<1x4x8xf32>
    %23 = vector.shape_cast %22 : vector<1x4x8xf32> to vector<4x8xf32>
    %cst_18 = arith.constant dense<0.000000e+00> : vector<128x8xf32>
    %24 = tpu.matmul %21, %23, %cst_18 {dimension_numbers = #tpu.dot_dimension_numbers<[1], [0], [0], [1], [0, 0, 1, 1], [], []>} : vector<128x4xf32>, vector<4x8xf32>, vector<128x8xf32> -> vector<128x8xf32>
    %25 = arith.addf %19, %24 : vector<128x8xf32>
    %26 = vector.extract_strided_slice %11 {offsets = [0, 2, 0], sizes = [8, 16, 4], strides = [1, 1, 1]} : vector<10x18x4xf32> to vector<8x16x4xf32>
    %27 = vector.shape_cast %26 : vector<8x16x4xf32> to vector<128x4xf32>
    %28 = vector.extract_strided_slice %12 {offsets = [2, 0, 0], sizes = [1, 4, 8], strides = [1, 1, 1]} : vector<9x4x8xf32> to vector<1x4x8xf32>
    %29 = vector.shape_cast %28 : vector<1x4x8xf32> to vector<4x8xf32>
    %cst_19 = arith.constant dense<0.000000e+00> : vector<128x8xf32>
    %30 = tpu.matmul %27, %29, %cst_19 {dimension_numbers = #tpu.dot_dimension_numbers<[1], [0], [0], [1], [0, 0, 1, 1], [], []>} : vector<128x4xf32>, vector<4x8xf32>, vector<128x8xf32> -> vector<128x8xf32>
    %31 = arith.addf %25, %30 : vector<128x8xf32>
    %32 = vector.extract_strided_slice %11 {offsets = [1, 0, 0], sizes = [8, 16, 4], strides = [1, 1, 1]} : vector<10x18x4xf32> to vector<8x16x4xf32>
    %33 = vector.shape_cast %32 : vector<8x16x4xf32> to vector<128x4xf32>
    %34 = vector.extract_strided_slice %12 {offsets = [3, 0, 0], sizes = [1, 4, 8], strides = [1, 1, 1]} : vector<9x4x8xf32> to vector<1x4x8xf32>
    %35 = vector.shape_cast %34 : vector<1x4x8xf32> to vector<4x8xf32>
    %cst_20 = arith.constant dense<0.000000e+00> : vector<128x8xf32>
    %36 = tpu.matmul %33, %35, %cst_20 {dimension_numbers = #tpu.dot_dimension_numbers<[1], [0], [0], [1], [0, 0, 1, 1], [], []>} : vector<128x4xf32>, vector<4x8xf32>, vector<128x8xf32> -> vector<128x8xf32>
    %37 = arith.addf %31, %36 : vector<128x8xf32>
    %38 = vector.extract_strided_slice %11 {offsets = [1, 1, 0], sizes = [8, 16, 4], strides = [1, 1, 1]} : vector<10x18x4xf32> to vector<8x16x4xf32>
    %39 = vector.shape_cast %38 : vector<8x16x4xf32> to vector<128x4xf32>
    %40 = vector.extract_strided_slice %12 {offsets = [4, 0, 0], sizes = [1, 4, 8], strides = [1, 1, 1]} : vector<9x4x8xf32> to vector<1x4x8xf32>
    %41 = vector.shape_cast %40 : vector<1x4x8xf32> to vector<4x8xf32>
    %cst_21 = arith.constant dense<0.000000e+00> : vector<128x8xf32>
    %42 = tpu.matmul %39, %41, %cst_21 {dimension_numbers = #tpu.dot_dimension_numbers<[1], [0], [0], [1], [0, 0, 1, 1], [], []>} : vector<128x4xf32>, vector<4x8xf32>, vector<128x8xf32> -> vector<128x8xf32>
    %43 = arith.addf %37, %42 : vector<128x8xf32>
    %44 = vector.extract_strided_slice %11 {offsets = [1, 2, 0], sizes = [8, 16, 4], strides = [1, 1, 1]} : vector<10x18x4xf32> to vector<8x16x4xf32>
    %45 = vector.shape_cast %44 : vector<8x16x4xf32> to vector<128x4xf32>
    %46 = vector.extract_strided_slice %12 {offsets = [5, 0, 0], sizes = [1, 4, 8], strides = [1, 1, 1]} : vector<9x4x8xf32> to vector<1x4x8xf32>
    %47 = vector.shape_cast %46 : vector<1x4x8xf32> to vector<4x8xf32>
    %cst_22 = arith.constant dense<0.000000e+00> : vector<128x8xf32>
    %48 = tpu.matmul %45, %47, %cst_22 {dimension_numbers = #tpu.dot_dimension_numbers<[1], [0], [0], [1], [0, 0, 1, 1], [], []>} : vector<128x4xf32>, vector<4x8xf32>, vector<128x8xf32> -> vector<128x8xf32>
    %49 = arith.addf %43, %48 : vector<128x8xf32>
    %50 = vector.extract_strided_slice %11 {offsets = [2, 0, 0], sizes = [8, 16, 4], strides = [1, 1, 1]} : vector<10x18x4xf32> to vector<8x16x4xf32>
    %51 = vector.shape_cast %50 : vector<8x16x4xf32> to vector<128x4xf32>
    %52 = vector.extract_strided_slice %12 {offsets = [6, 0, 0], sizes = [1, 4, 8], strides = [1, 1, 1]} : vector<9x4x8xf32> to vector<1x4x8xf32>
    %53 = vector.shape_cast %52 : vector<1x4x8xf32> to vector<4x8xf32>
    %cst_23 = arith.constant dense<0.000000e+00> : vector<128x8xf32>
    %54 = tpu.matmul %51, %53, %cst_23 {dimension_numbers = #tpu.dot_dimension_numbers<[1], [0], [0], [1], [0, 0, 1, 1], [], []>} : vector<128x4xf32>, vector<4x8xf32>, vector<128x8xf32> -> vector<128x8xf32>
    %55 = arith.addf %49, %54 : vector<128x8xf32>
    %56 = vector.extract_strided_slice %11 {offsets = [2, 1, 0], sizes = [8, 16, 4], strides = [1, 1, 1]} : vector<10x18x4xf32> to vector<8x16x4xf32>
    %57 = vector.shape_cast %56 : vector<8x16x4xf32> to vector<128x4xf32>
    %58 = vector.extract_strided_slice %12 {offsets = [7, 0, 0], sizes = [1, 4, 8], strides = [1, 1, 1]} : vector<9x4x8xf32> to vector<1x4x8xf32>
    %59 = vector.shape_cast %58 : vector<1x4x8xf32> to vector<4x8xf32>
    %cst_24 = arith.constant dense<0.000000e+00> : vector<128x8xf32>
    %60 = tpu.matmul %57, %59, %cst_24 {dimension_numbers = #tpu.dot_dimension_numbers<[1], [0], [0], [1], [0, 0, 1, 1], [], []>} : vector<128x4xf32>, vector<4x8xf32>, vector<128x8xf32> -> vector<128x8xf32>
    %61 = arith.addf %55, %60 : vector<128x8xf32>
    %62 = vector.extract_strided_slice %11 {offsets = [2, 2, 0], sizes = [8, 16, 4], strides = [1, 1, 1]} : vector<10x18x4xf32> to vector<8x16x4xf32>
    %63 = vector.shape_cast %62 : vector<8x16x4xf32> to vector<128x4xf32>
    %64 = vector.extract_strided_slice %12 {offsets = [8, 0, 0], sizes = [1, 4, 8], strides = [1, 1, 1]} : vector<9x4x8xf32> to vector<1x4x8xf32>
    %65 = vector.shape_cast %64 : vector<1x4x8xf32> to vector<4x8xf32>
    %cst_25 = arith.constant dense<0.000000e+00> : vector<128x8xf32>
    %66 = tpu.matmul %63, %65, %cst_25 {dimension_numbers = #tpu.dot_dimension_numbers<[1], [0], [0], [1], [0, 0, 1, 1], [], []>} : vector<128x4xf32>, vector<4x8xf32>, vector<128x8xf32> -> vector<128x8xf32>
    %67 = arith.addf %61, %66 : vector<128x8xf32>
    %c0_26 = arith.constant 0 : index
    %c0_27 = arith.constant 0 : index
    %68 = vector.load %arg6[%c0_26, %c0_27] : memref<1x8xf32, #tpu.memory_space<vmem>>, vector<1x8xf32>
    %69 = vector.broadcast %68 : vector<1x8xf32> to vector<128x8xf32>
    %70 = arith.addf %67, %69 : vector<128x8xf32>
    %71 = vector.shape_cast %70 : vector<128x8xf32> to vector<8x16x8xf32>
    %c0_28 = arith.constant 0 : index
    %c0_29 = arith.constant 0 : index
    %c0_30 = arith.constant 0 : index
    %c0_31 = arith.constant 0 : index
    %72 = vector.load %arg7[%c0_28, %c0_29, %c0_30, %c0_31] : memref<1x8x16x8xf32, #tpu.memory_space<vmem>>, vector<1x8x16x8xf32>
    %73 = vector.shape_cast %72 : vector<1x8x16x8xf32> to vector<8x16x8xf32>
    %74 = vector.shape_cast %71 : vector<8x16x8xf32> to vector<1x8x16x8xf32>
    tpu.vector_store %arg7[%c0_28, %c0_29, %c0_30, %c0_31], %74 {strides = array<i32>} : memref<1x8x16x8xf32, #tpu.memory_space<vmem>>, vector<1x8x16x8xf32>,
    return
  }
  func.func @transform_0(%arg0: i32, %arg1: i32) -> (i32, i32, i32, i32) {
    %c0_i32 = arith.constant 0 : i32
    %c0_i32_0 = arith.constant 0 : i32
    %c0_i32_1 = arith.constant 0 : i32
    return %arg0, %arg1, %c0_i32, %c0_i32_0 : i32, i32, i32, i32
  }
  func.func @transform_1(%arg0: i32, %arg1: i32) -> (i32, i32, i32, i32) {
    %c8_i32 = arith.constant 8 : i32
    %0 = arith.muli %arg1, %c8_i32 : i32
    %c1_i32 = arith.constant 1 : i32
    %1 = arith.subi %0, %c1_i32 : i32
    %c0_i32 = arith.constant 0 : i32
    %2 = arith.maxsi %1, %c0_i32 : i32
    %c0_i32_0 = arith.constant 0 : i32
    %c0_i32_1 = arith.constant 0 : i32
    %c0_i32_2 = arith.constant 0 : i32
    return %arg0, %2, %c0_i32_0, %c0_i32_1 : i32, i32, i32, i32
  }
  func.func @transform_2(%arg0: i32, %arg1: i32) -> (i32, i32, i32, i32) {
    %c1_i32 = arith.constant 1 : i32
    %0 = arith.addi %arg1, %c1_i32 : i32
    %c8_i32 = arith.constant 8 : i32
    %1 = arith.muli %0, %c8_i32 : i32
    %c15_i32 = arith.constant 15 : i32
    %2 = arith.minsi %1, %c15_i32 : i32
    %c0_i32 = arith.constant 0 : i32
    %c0_i32_0 = arith.constant 0 : i32
    %c0_i32_1 = arith.constant 0 : i32
    return %arg0, %2, %c0_i32, %c0_i32_0 : i32, i32, i32, i32
  }
  func.func @transform_3(%arg0: i32, %arg1: i32) -> (i32, i32, i32) {
    %c0_i32 = arith.constant 0 : i32
    %c0_i32_0 = arith.constant 0 : i32
    %c0_i32_1 = arith.constant 0 : i32
    %c0_i32_2 = arith.constant 0 : i32
    return %c0_i32, %c0_i32_0, %c0_i32_1 : i32, i32, i32
  }
  func.func @transform_4(%arg0: i32, %arg1: i32) -> (i32, i32) {
    %c0_i32 = arith.constant 0 : i32
    %c0_i32_0 = arith.constant 0 : i32
    %c0_i32_1 = arith.constant 0 : i32
    return %c0_i32, %c0_i32_0 : i32, i32
  }
  func.func @transform_5(%arg0: i32, %arg1: i32) -> (i32, i32, i32, i32) {
    %c0_i32 = arith.constant 0 : i32
    %c0_i32_0 = arith.constant 0 : i32
    %c0_i32_1 = arith.constant 0 : i32
    return %arg0, %arg1, %c0_i32, %c0_i32_0 : i32, i32, i32, i32
  }
}

</mosaic_0001>

<bundles_post_ra>
// kernel: tpu_custom_call.1
= control target key start
LH: loop header
LB: loop body
LE: loop exit
PB: predicated region body
PF: predicated region fallthrough
CT: control target
= control target key end

     0   :  { %s3223_s18 = smov 0   ;;  %s3225_s19 = smov 0   ;;  %s3974_s0 = inlined_call_operand.vmem [shape: f32[2,16,16,4], index: 0, kind: input, shape index: {}]   ;;  %s3975_s1 = inlined_call_operand.vmem [shape: f32[2,16,16,4], index: 1, kind: input, shape index: {}]   ;;  %s3976_s2 = inlined_call_operand.vmem [shape: f32[2,16,16,4], index: 2, kind: input, shape index: {}]   ;;  %s3977_s3 = inlined_call_operand.vmem [shape: f32[9,4,8], index: 3, kind: input, shape index: {}]   ;;  %s3978_s4 = inlined_call_operand.vmem [shape: f32[1,8], index: 4, kind: input, shape index: {}]   ;;  %s3979_s5 = inlined_call_operand.vmem [shape: f32[2,16,16,8], index: 5, kind: output, shape index: {}]  }
   0x1   :  { %s3227_s20 = smov 0   ;;  %s3229_s21 = smov 0  }
   0x2   :  { %s3231_s22 = smov 0  }
   0x3 LB: > { %s24_s23 = sadd.s32 1, %s3182_s20  ;;  %s27_s24 = sadd.s32 1, %s3186_s21  ;;  %s3190_s22 = sphi %s3231_s22, %s15_s22   ;;  %s3186_s21 = sphi %s3229_s21, %s3984_s21   ;;  %s3182_s20 = sphi %s3227_s20, %s3983_s20   ;;  %s3178_s19 = sphi %s3225_s19, %s3982_s19   ;;  %s3174_s18 = sphi %s3223_s18, %s3981_s18  }
   0x4   : > { %p25_p0 = scmp.ge.s32.totalorder %s24_s23, 2  ;;  %p2402_p1 = scmp.ge.s32.totalorder %s3190_s22, 1 }
   0x5   : > { %p273_p2 = scmp.lt.s32.totalorder %s3190_s22, 5 }
   0x6   : > { %s3986_s23 = smov (%p25_p0, %s24_s23), 0  ;;  %s3988_s24 = smov (!%p25_p0, %s27_s24), %s3186_s21 }
   0x7   : > { %p274_p3 = pnand %p2402_p1, %p273_p2  ;;  %p29_p4 = scmp.ge.s32.totalorder %s3988_s24, 2 }
   0x8   : > { %vm393_vm0 = vcmask (!%p274_p3), 31744   ;;  %vm396_vm1 = vcmask (!%p274_p3), 25600   ;;  %s3258_s25 = sshll.u32 (!%p274_p3), %s3174_s18, 3  ;;  %p338_p5 = scmp.lt.s32.totalorder (!%p274_p3), %s3178_s19, 1  ;;  %v3192_v0 = vmov (!%p274_p3), 0.0  }
   0x9   : > { %s3990_s24 = smov (%p29_p4, %s3988_s24), 0  ;;  %277 = sbr.rel (%p274_p3) target bundleno = 409 (0x199), region = 40 }
   0xa   : > { %398 = vst.msk [vmem:[#allocation2 + $0x18] sm:$0xff] (!%p274_p3), %vm393_vm0, %v3192_v0  ;;  %394 = vst.msk [vmem:[#allocation2] sm:$0xff] (!%p274_p3), %vm393_vm0, %v3192_v0  ;;  %p340_p6 = scmp.lt.s32.totalorder (!%p274_p3), %s3258_s25, 15  ;;  %s2408_s26 = sadd.s32 (!%p274_p3), 4294967295, %s3258_s25 }
   0xb   : > { %395 = vst.msk [vmem:[#allocation2 + $0x8] sm:$0xff] (!%p274_p3), %vm393_vm0, %v3192_v0  ;;  %399 = vst.msk [vmem:[#allocation2 + $0x20] sm:$0xff] (!%p274_p3), %vm393_vm0, %v3192_v0  ;;  %p350_p7 = scmp.gt.s32.totalorder (!%p274_p3), %s2408_s26, 0  ;;  %p2409_p8 = scmp.lt.s32.totalorder (!%p274_p3), %s2408_s26, 15 }
   0xc   : > { %401 = vst.msk [vmem:[#allocation2 + $0x30] sm:$0xff] (!%p274_p3), %vm393_vm0, %v3192_v0  ;;  %402 = vst.msk [vmem:[#allocation2 + $0x38] sm:$0xff] (!%p274_p3), %vm393_vm0, %v3192_v0  ;;  %s2593_s6 = sadd.s32 (!%p274_p3), 8, %s3258_s25  ;;  %p2428_p10 = scmp.le.s32.totalorder (!%p274_p3), %s3174_s18, 0 }
   0xd   : > { %404 = vst.msk [vmem:[#allocation2 + $0x48] sm:$0xff] (!%p274_p3), %vm393_vm0, %v3192_v0  ;;  %405 = vst.msk [vmem:[#allocation2 + $0x50] sm:$0xff] (!%p274_p3), %vm393_vm0, %v3192_v0  ;;  %p3301_p9 = scmp.lt.s32.totalorder (!%p274_p3), %s2593_s6, 15 }
   0xe   : > { %407 = vst.msk [vmem:[#allocation2 + $0x60] sm:$0xff] (!%p274_p3), %vm393_vm0, %v3192_v0  ;;  %408 = vst.msk [vmem:[#allocation2 + $0x68] sm:$0xff] (!%p274_p3), %vm393_vm0, %v3192_v0 }
   0xf   : > { %410 = vst.msk [vmem:[#allocation2 + $0x78] sm:$0xff] (!%p274_p3), %vm393_vm0, %v3192_v0  ;;  %411 = vst.msk [vmem:[#allocation2 + $0x80] sm:$0xff] (!%p274_p3), %vm393_vm0, %v3192_v0 }
  0x10   : > { %413 = vst.msk [vmem:[#allocation2 + $0x90] sm:$0xff] %vm393_vm0, %v3192_v0  ;;  %414 = vst.msk [vmem:[#allocation2 + $0x98] sm:$0xff] %vm393_vm0, %v3192_v0  ;;  %s3992_s19 = smov (!%p338_p5, %s3178_s19), 1  ;;  %s3994_s6 = smov (!%p3301_p9, %s2593_s6), 15 }
  0x11   : > { %416 = vst.msk [vmem:[#allocation2 + $0xa8] sm:$0xff] %vm393_vm0, %v3192_v0  ;;  %417 = vst.msk [vmem:[#allocation2 + $0xb0] sm:$0xff] %vm393_vm0, %v3192_v0  ;;  %s341_s27 = scalar_select %p340_p6, %s3258_s25, 15 }
  0x12   : > { %419 = vst.msk [vmem:[#allocation2 + $0xc0] sm:$0xff] %vm393_vm0, %v3192_v0  ;;  %420 = vst.msk [vmem:[#allocation2 + $0xc8] sm:$0xff] %vm393_vm0, %v3192_v0  ;;  %s3297_s28 = sshll.u32 %s3992_s19, 5  ;;  %s3998_s6 = smov (!%p3301_p9, %s3994_s6), 15 }
  0x13   : > { %422 = vst.msk [vmem:[#allocation2 + $0xd8] sm:$0xff] %vm393_vm0, %v3192_v0  ;;  %423 = vst.msk [vmem:[#allocation2 + $0xe0] sm:$0xff] %vm393_vm0, %v3192_v0  ;;  %s2404_s29 = sshll.u32 %s341_s27, 1  ;;  %s2421_s19 = sshll.u32 %s3998_s6, 1 }
  0x14   : > { %400 = vst.msk [vmem:[#allocation2 + $0x28] sm:$0x3] %vm396_vm1, %v3192_v0  ;;  %397 = vst.msk [vmem:[#allocation2 + $0x10] sm:$0x3] %vm396_vm1, %v3192_v0  ;;  %s344_s30 = sadd.s32 %s3297_s28, %s2404_s29 }
  0x15   : > { %403 = vst.msk [vmem:[#allocation2 + $0x40] sm:$0x3] %vm396_vm1, %v3192_v0  ;;  %406 = vst.msk [vmem:[#allocation2 + $0x58] sm:$0x3] %vm396_vm1, %v3192_v0  ;;  %s2406_s7 = sshll.u32 %s344_s30, 3 }
  0x16   : > { %409 = vst.msk [vmem:[#allocation2 + $0x70] sm:$0x3] %vm396_vm1, %v3192_v0  ;;  %412 = vst.msk [vmem:[#allocation2 + $0x88] sm:$0x3] %vm396_vm1, %v3192_v0  ;;  %s3308_s11 = scalar_lea.vmem %s3974_s0, %s2406_s7  ;;  %s3313_s14 = scalar_lea.vmem %s3979_s5, %s2406_s7 }
  0x17   : > { %415 = vst.msk [vmem:[#allocation2 + $0xa0] sm:$0x3] %vm396_vm1, %v3192_v0  ;;  %418 = vst.msk [vmem:[#allocation2 + $0xb8] sm:$0x3] %vm396_vm1, %v3192_v0  ;;  %s351_s15 = scalar_select %p350_p7, %s2408_s26, 0  ;;  %v425_v1 = vld [vmem:[%s3308_s11] sm:$0xff] }
  0x18   : > { %421 = vst.msk [vmem:[#allocation2 + $0xd0] sm:$0x3] %vm396_vm1, %v3192_v0  ;;  %424 = vst.msk [vmem:[#allocation2 + $0xe8] sm:$0x3] %vm396_vm1, %v3192_v0  ;;  %v426_v2 = vld [vmem:[%s3308_s11 + $0x8] sm:$0xff]  ;;  %v427_v3 = vld [vmem:[%s3308_s11 + $0x10] sm:$0xff]  ;;  %s375_s26 = sadd.s32 %s2421_s19, %s3297_s28 }
  0x19   : > { %442 = vst.msk [vmem:[#allocation2 + $0x19] sm:$0xff] %vm393_vm0, %v425_v1  ;;  %443 = vst.msk [vmem:[#allocation2 + $0x21] sm:$0xff] %vm393_vm0, %v426_v2  ;;  %v428_v4 = vld [vmem:[%s3308_s11 + $0x18] sm:$0xff]  ;;  %v429_v5 = vld [vmem:[%s3308_s11 + $0x20] sm:$0xff]  ;;  %s3996_s15 = smov (!%p2409_p8, %s351_s15), 15  ;;  %s2423_s7 = sshll.u32 %s375_s26, 3 }
  0x1a   : > { %444 = vst.msk [vmem:[#allocation2 + $0x31] sm:$0xff] %vm393_vm0, %v427_v3  ;;  %v430_v6 = vld [vmem:[%s3308_s11 + $0x28] sm:$0xff]  ;;  %445 = vst.msk [vmem:[#allocation2 + $0x39] sm:$0xff] %vm393_vm0, %v428_v4  ;;  %v431_v7 = vld [vmem:[%s3308_s11 + $0x30] sm:$0xff]  ;;  %s2414_s16 = sshll.u32 %s3996_s15, 1  ;;  %s377_s6 = scalar_lea.vmem %s3976_s2, %s2423_s7 }
  0x1b   : > { %446 = vst.msk [vmem:[#allocation2 + $0x49] sm:$0xff] %vm393_vm0, %v429_v5  ;;  %447 = vst.msk [vmem:[#allocation2 + $0x51] sm:$0xff] %vm393_vm0, %v430_v6  ;;  %v432_v8 = vld [vmem:[%s3308_s11 + $0x38] sm:$0xff]  ;;  %v433_v9 = vld [vmem:[%s3308_s11 + $0x40] sm:$0xff]  ;;  %s358_s17 = sadd.s32 %s2414_s16, %s3297_s28  ;;  %461 = sbr.rel (%p2428_p10) target bundleno = 34 (0x22), region = 44 }
  0x1c   : > { %448 = vst.msk [vmem:[#allocation2 + $0x61] sm:$0xff] %vm393_vm0, %v431_v7  ;;  %449 = vst.msk [vmem:[#allocation2 + $0x69] sm:$0xff] %vm393_vm0, %v432_v8  ;;  %v434_v10 = vld [vmem:[%s3308_s11 + $0x48] sm:$0xff]  ;;  %v435_v11 = vld [vmem:[%s3308_s11 + $0x50] sm:$0xff]  ;;  %s2416_s25 = sshll.u32 %s358_s17, 3 }
  0x1d   : > { %450 = vst.msk [vmem:[#allocation2 + $0x79] sm:$0xff] %vm393_vm0, %v433_v9  ;;  %v436_v12 = vld [vmem:[%s3308_s11 + $0x58] sm:$0xff]  ;;  %451 = vst.msk [vmem:[#allocation2 + $0x81] sm:$0xff] %vm393_vm0, %v434_v10  ;;  %v437_v13 = vld [vmem:[%s3308_s11 + $0x60] sm:$0xff]  ;;  %s360_s30 = scalar_lea.vmem %s3975_s1, %s2416_s25 }
  0x1e   : > { %452 = vst.msk [vmem:[#allocation2 + $0x91] sm:$0xff] %vm393_vm0, %v435_v11  ;;  %453 = vst.msk [vmem:[#allocation2 + $0x99] sm:$0xff] %vm393_vm0, %v436_v12  ;;  %v438_v14 = vld [vmem:[%s3308_s11 + $0x68] sm:$0xff]  ;;  %v439_v15 = vld [vmem:[%s3308_s11 + $0x70] sm:$0xff] }
  0x1f   : > { %454 = vst.msk [vmem:[#allocation2 + $0xa9] sm:$0xff] %vm393_vm0, %v437_v13  ;;  %455 = vst.msk [vmem:[#allocation2 + $0xb1] sm:$0xff] %vm393_vm0, %v438_v14  ;;  %v440_v16 = vld [vmem:[%s3308_s11 + $0x78] sm:$0xff]  ;;  %v462_v17 = vld [vmem:[%s360_s30] sm:$0xff] (!%p2428_p10) }
  0x20   : > { %456 = vst.msk [vmem:[#allocation2 + $0xc1] sm:$0xff] %vm393_vm0, %v439_v15  ;;  %457 = vst.msk [vmem:[#allocation2 + $0xc9] sm:$0xff] %vm393_vm0, %v440_v16  ;;  %v463_v18 = vld [vmem:[%s360_s30 + $0x8] sm:$0xff] (!%p2428_p10) }
  0x21   : > { %464 = vst.msk [vmem:[#allocation2 + $0x1] sm:$0xff] (!%p2428_p10), %vm393_vm0, %v462_v17  ;;  %465 = vst.msk [vmem:[#allocation2 + $0x9] sm:$0xff] (!%p2428_p10), %vm393_vm0, %v463_v18 }
  0x22 PF: > { %p2429_p11 = scmp.ge.s32.totalorder %s3174_s18, 1 }
  0x23   : > { %v470_v19 = vld [vmem:[%s377_s6] sm:$0xff] (!%p2429_p11)  ;;  %v471_v20 = vld [vmem:[%s377_s6 + $0x8] sm:$0xff] (!%p2429_p11) }
  0x24   : > { %469 = sbr.rel (%p2429_p11) target bundleno = 43 (0x2b), region = 48  ;;  %473 = vst.msk [vmem:[#allocation2 + $0xd9] sm:$0xff] (!%p2429_p11), %vm393_vm0, %v470_v19  ;;  %474 = vst.msk [vmem:[#allocation2 + $0xe1] sm:$0xff] (!%p2429_p11), %vm393_vm0, %v471_v20 }
  0x2b PF: > { %v506_v21 = vld [vmem:[%s3977_s3 + $0x4] sm:$0xf]  ;;  %vm611_vm2 = vcmask 1043456   ;;  %v3375_v22 = vld [vmem:[%s3977_s3 + $0x10] sm:$0xf]  ;;  %v3382_v24 = vld [vmem:[#allocation2 + $0x8] sm:$0xff] }
  0x2c   : > { %v3377_v23 = vld [vmem:[#allocation2] sm:$0xff]  ;;  %2747 = vmatprep.subr.msk.mxu1 %vm611_vm2, %v506_v21  ;;  %2851 = vmatprep.subr.msk.mxu0 %vm611_vm2, %v3375_v22  ;;  %vm538_vm3 = vcmask 1046528   ;;  %v3388_v27 = vld [vmem:[#allocation2 + $0x18] sm:$0xff]  ;;  %v540_v28 = vrot.slane %v3382_v24, 1  ;;  %v510_v31 = vld [vmem:[%s3977_s3 + $0x14] sm:$0xf] }
  0x2d   : > { %v539_v25 = vrot.slane %v3377_v23, 1  ;;  %v505_v26 = vld [vmem:[%s3977_s3] sm:$0xf]  ;;  %2748 = vmatpush3.msk.msra.mxu1 %vm611_vm2, %v506_v21  ;;  %2852 = vmatpush3.msk.msra.mxu0 %vm611_vm2, %v3375_v22  ;;  %v544_v30 = vrot.slane %v3388_v27, 1  ;;  %v3400_v32 = vld [vmem:[#allocation2 + $0x30] sm:$0xff]  ;;  %v3409_v36 = vld [vmem:[#allocation2 + $0x38] sm:$0xff] }
  0x2e   : > { %v3394_v29 = vld [vmem:[#allocation2 + $0x20] sm:$0xff]  ;;  %2773 = vmatprep.subr.msk.mxu1 %vm611_vm2, %v505_v26  ;;  %2877 = vmatprep.subr.msk.mxu0 %vm611_vm2, %v510_v31  ;;  %v3405_v34 = vld [vmem:[#allocation2 + $0x10] sm:$0x3]  ;;  %v3407_v35 = vld [vmem:[#allocation2 + $0x28] sm:$0x3]  ;;  %v549_v43 = vrot.slane %v3400_v32, 1 }
  0x2f   : > { %v545_v33 = vrot.slane %v3394_v29, 1  ;;  %v541_v37 = vsel %vm538_vm3, %v539_v25, %v540_v28  ;;  %v542_v38 = vrot.slane %v3405_v34, 1  ;;  %v547_v39 = vrot.slane %v3407_v35, 1  ;;  %v3414_v40 = vld [vmem:[#allocation2 + $0x40] sm:$0x3]  ;;  %v3416_v41 = vld [vmem:[#allocation2 + $0x48] sm:$0xff] }
  0x30   : > { %2749 = vmatprep.mubr.msk.f32.mxu1 %vm393_vm0, %v541_v37  ;;  %v550_v44 = vrot.slane %v3409_v36, 1  ;;  %v3422_v45 = vld [vmem:[#allocation2 + $0x50] sm:$0xff]  ;;  %v3424_v46 = vld [vmem:[#allocation2 + $0x58] sm:$0x3]  ;;  %v552_v49 = vrot.slane %v3414_v40, 1  ;;  %v554_v50 = vrot.slane %v3416_v41, 1 }
  0x31   : > { %v546_v42 = vsel %vm538_vm3, %v544_v30, %v545_v33  ;;  %v543_v47 = vsel %vm538_vm3, %v540_v28, %v542_v38  ;;  %v548_v48 = vsel %vm538_vm3, %v545_v33, %v547_v39  ;;  %v3431_v51 = vld [vmem:[#allocation2 + $0x60] sm:$0xff]  ;;  %v3433_v52 = vld [vmem:[#allocation2 + $0x68] sm:$0xff]  ;;  %v555_v54 = vrot.slane %v3422_v45, 1  ;;  %v511_v55 = vld [vmem:[%s3977_s3 + $0x18] sm:$0xf] }
  0x32   : > { %2853 = vmatprep.mubr.msk.f32.mxu0 %vm393_vm0, %v546_v42  ;;  %2750 = vmatmul.mubr.msk.f32.vlgmr.msra.gmra.mrb[0].mxu1 %vm393_vm0, %v543_v47  ;;  %v3438_v53 = vsel %vm538_vm3, %v549_v43, %v550_v44  ;;  %v3447_v56 = vsel %vm538_vm3, %v550_v44, %v552_v49  ;;  %v557_v57 = vrot.slane %v3424_v46, 1  ;;  %v559_v59 = vrot.slane %v3431_v51, 1  ;;  %v3458_v61 = vld [vmem:[#allocation2 + $0x70] sm:$0x3]  ;;  %v3467_v62 = vld [vmem:[%s3977_s3 + $0x8] sm:$0xf] }
  0x33   : > { %2854 = vmatmul.mubr.msk.f32.vlgmr.msra.gmra.mrb[0].mxu0 %vm393_vm0, %v548_v48  ;;  %2774 = vmatpush3.msk.msra.mxu1 %vm611_vm2, %v505_v26  ;;  %v3454_v58 = vsel %vm538_vm3, %v554_v50, %v555_v54  ;;  %v560_v60 = vrot.slane %v3433_v52, 1  ;;  %v562_v0 = vrot.slane %v3458_v61, 1  ;;  %v946_v2 = vrot.slane %v3388_v27, 2  ;;  %v3484_v4 = vld [vmem:[#allocation2 + $0x78] sm:$0xff]  ;;  %v3486_v5 = vld [vmem:[#allocation2 + $0x80] sm:$0xff]  ;;  %v3507_v12 = vld [vmem:[#allocation2 + $0x90] sm:$0xff] }
  0x34   : > { %2878 = vmatpush3.msk.msra.mxu0 %vm611_vm2, %v510_v31  ;;  %2752 = vmatprep.mubr.msk.f32.mxu1 %vm393_vm0, %v546_v42  ;;  %v3474_v63 = vsel %vm538_vm3, %v555_v54, %v557_v57  ;;  %v947_v3 = vrot.slane %v3394_v29, 2  ;;  %vm940_vm4 = vcmask 1045504   ;;  %v949_v6 = vrot.slane %v3407_v35, 2  ;;  %v3500_v8 = vld [vmem:[#allocation2 + $0x88] sm:$0x3]  ;;  %v3509_v13 = vld [vmem:[#allocation2 + $0x98] sm:$0xff] }
  0x35   : > { %2856 = vmatprep.mubr.msk.f32.mxu0 %vm393_vm0, %v3438_v53  ;;  %2903 = vmatprep.subr.msk.mxu0 %vm611_vm2, %v511_v55  ;;  %v3478_v1 = vsel %vm538_vm3, %v559_v59, %v560_v60  ;;  %v3498_v7 = vsel %vm538_vm3, %v560_v60, %v562_v0  ;;  %v564_v10 = vrot.slane %v3484_v4, 1  ;;  %v565_v11 = vrot.slane %v3486_v5, 1  ;;  %v495_v28 = vld [vmem:[#allocation2 + $0xa0] sm:$0x3]  ;;  %v3536_v31 = vld [vmem:[#allocation2 + $0xa8] sm:$0xff]  ;;  %v3538_v33 = vld [vmem:[#allocation2 + $0xb0] sm:$0xff] }
  0x36   : > { %2753 = vmatmul.mubr.msk.f32.gmra.mrb[2].mxu1 %vm393_vm0, %v548_v48  ;;  %2799 = vmatprep.subr.msk.mxu1 %vm611_vm2, %v3467_v62  ;;  %v3503_v9 = vsel %vm940_vm4, %v946_v2, %v947_v3  ;;  %v951_v14 = vrot.slane %v3400_v32, 2  ;;  %v952_v15 = vrot.slane %v3409_v36, 2  ;;  %v3518_v16 = vsel %vm940_vm4, %v947_v3, %v949_v6  ;;  %v3543_v35 = vld [vmem:[%s3977_s3 + $0x1c] sm:$0xf]  ;;  %v498_v50 = vld [vmem:[#allocation2 + $0xb8] sm:$0x3] }
  0x37   : > { %2857 = vmatmul.mubr.msk.f32.gmra.mrb[2].mxu0 %vm393_vm0, %v3447_v56  ;;  %2755 = vmatprep.mubr.msk.f32.mxu1 %vm393_vm0, %v3438_v53  ;;  %v567_v17 = vrot.slane %v3500_v8, 1  ;;  %v954_v18 = vrot.slane %v3414_v40, 2  ;;  %v569_v19 = vrot.slane %v3507_v12, 1  ;;  %v570_v20 = vrot.slane %v3509_v13, 1 }
  0x38   : > { %2859 = vmatprep.mubr.msk.f32.mxu0 %vm393_vm0, %v3454_v58  ;;  %v956_v21 = vrot.slane %v3416_v41, 2  ;;  %v957_v25 = vrot.slane %v3422_v45, 2  ;;  %v3531_v26 = vsel %vm538_vm3, %v564_v10, %v565_v11  ;;  %v3534_v30 = vsel %vm940_vm4, %v951_v14, %v952_v15 }
  0x39   : > { %v3550_v37 = vsel %vm538_vm3, %v565_v11, %v567_v17  ;;  %v3553_v38 = vsel %vm940_vm4, %v952_v15, %v954_v18  ;;  %v3559_v39 = vsel %vm538_vm3, %v569_v19, %v570_v20  ;;  %v572_v42 = vrot.slane %v495_v28, 1 }
  0x3a   : > { %2756 = vmatmul.mubr.msk.f32.gmra.mrb[4].mxu1 %vm393_vm0, %v3447_v56  ;;  %v3562_v40 = vsel %vm940_vm4, %v956_v21, %v957_v25  ;;  %v959_v43 = vrot.slane %v3424_v46, 2  ;;  %v574_v44 = vrot.slane %v3536_v31, 1  ;;  %v575_v47 = vrot.slane %v3538_v33, 1  ;;  %v3634_v21 = vld [vmem:[#allocation2 + $0xc8] sm:$0xff] }
  0x3b   : > { %2860 = vmatmul.mubr.msk.f32.gmra.mrb[4].mxu0 %vm393_vm0, %v3474_v63  ;;  %2758 = vmatprep.mubr.msk.f32.mxu1 %vm393_vm0, %v3454_v58  ;;  %v961_v48 = vrot.slane %v3431_v51, 2  ;;  %v962_v49 = vrot.slane %v3433_v52, 2  ;;  %v3582_v46 = vsel %vm538_vm3, %v570_v20, %v572_v42  ;;  %v964_v57 = vrot.slane %v3458_v61, 2  ;;  %v3632_v20 = vld [vmem:[#allocation2 + $0xc0] sm:$0xff] }
  0x3c   : > { %2862 = vmatprep.mubr.msk.f32.mxu0 %vm393_vm0, %v3478_v1  ;;  %v3585_v54 = vsel %vm940_vm4, %v957_v25, %v959_v43  ;;  %v3589_v59 = vsel %vm538_vm3, %v574_v44, %v575_v47  ;;  %v966_v0 = vrot.slane %v3484_v4, 2  ;;  %v967_v2 = vrot.slane %v3486_v5, 2  ;;  %v508_v25 = vld [vmem:[%s3977_s3 + $0xc] sm:$0xf] }
  0x3d   : > { %v3592_v60 = vsel %vm940_vm4, %v961_v48, %v962_v49  ;;  %v3608_v3 = vsel %vm940_vm4, %v962_v49, %v964_v57  ;;  %v969_v6 = vrot.slane %v3500_v8, 2  ;;  %v971_v11 = vrot.slane %v3507_v12, 2  ;;  %v3657_v48 = vld [vmem:[#allocation2 + $0xd0] sm:$0x3]  ;;  %v513_v57 = vld [vmem:[%s3977_s3 + $0x20] sm:$0xf] }
  0x3e   : > { %2759 = vmatmul.mubr.msk.f32.gmra.mrb[6].mxu1 %vm393_vm0, %v3474_v63  ;;  %v3612_v10 = vsel %vm940_vm4, %v966_v0, %v967_v2  ;;  %v972_v14 = vrot.slane %v3509_v13, 2  ;;  %v974_v15 = vrot.slane %v495_v28, 2  ;;  %v976_v17 = vrot.slane %v3536_v31, 2 }
  0x3f   : > { %2863 = vmatmul.mubr.msk.f32.gmra.mrb[6].mxu0 %vm393_vm0, %v3498_v7  ;;  %2761 = vmatprep.mubr.msk.f32.mxu1 %vm393_vm0, %v3478_v1  ;;  %v3625_v8 = vsel %vm940_vm4, %v967_v2, %v969_v6  ;;  %v977_v18 = vrot.slane %v3538_v33, 2  ;;  %v979_v42 = vrot.slane %v498_v50, 2  ;;  %v1521_v44 = vrot.slane %v3632_v20, 2 }
  0x40   : > { %2879 = vmatprep.mubr.msk.f32.mxu0 %vm393_vm0, %v3503_v9  ;;  %v3630_v19 = vsel %vm940_vm4, %v971_v11, %v972_v14  ;;  %v3648_v28 = vsel %vm940_vm4, %v972_v14, %v974_v15  ;;  %v1524_v49 = vrot.slane %v3657_v48, 2  ;;  %v942_v0 = vrot.slane %v3382_v24, 2 }
  0x41   : > { %v3653_v43 = vsel %vm940_vm4, %v976_v17, %v977_v18  ;;  %v944_v2 = vrot.slane %v3405_v34, 2  ;;  %v3764_v34 = vld [vmem:[#allocation2 + $0xe0] sm:$0xff]  ;;  %vm2234_vm5 = vcmask 64512  }
  0x42   : > { %2762 = vmatmul.mubr.msk.f32.gmra.mrb[8].mxu1 %vm393_vm0, %v3498_v7 }
  0x43   : > { %2880 = vmatmul.mubr.msk.f32.vlgmr.msra.gmra.mrb[0].mxu0 %vm393_vm0, %v3518_v16  ;;  %2764 = vmatprep.mubr.msk.f32.mxu1 %vm393_vm0, %v3531_v26 }
  0x44   : > { %2904 = vmatpush3.msk.msra.mxu0 %vm611_vm2, %v511_v55  ;;  %2882 = vmatprep.mubr.msk.f32.mxu0 %vm393_vm0, %v3534_v30  ;;  %v577_v55 = vrot.slane %v498_v50, 1 }
  0x45   : > { %2929 = vmatprep.subr.msk.mxu0 %vm611_vm2, %v3543_v35 }
  0x46   : > { %2765 = vmatmul.mubr.msk.f32.gmra.mrb[10].mxu1 %vm393_vm0, %v3550_v37  ;;  %v3605_v61 = vsel %vm538_vm3, %v575_v47, %v577_v55  ;;  %v1522_v47 = vrot.slane %v3634_v21, 2 }
  0x47   : > { %2883 = vmatmul.mubr.msk.f32.gmra.mrb[2].mxu0 %vm393_vm0, %v3553_v38  ;;  %2767 = vmatprep.mubr.msk.f32.mxu1 %vm393_vm0, %v3559_v39 }
  0x48   : > { %2885 = vmatprep.mubr.msk.f32.mxu0 %vm393_vm0, %v3562_v40  ;;  %v3673_v50 = vsel %vm940_vm4, %v1521_v44, %v1522_v47  ;;  %v3684_v55 = vsel %vm940_vm4, %v1522_v47, %v1524_v49 }
  0x4a   : > { %2768 = vmatmul.mubr.msk.f32.gmra.mrb[12].mxu1 %vm393_vm0, %v3582_v46 }
  0x4b   : > { %2886 = vmatmul.mubr.msk.f32.gmra.mrb[4].mxu0 %vm393_vm0, %v3585_v54  ;;  %2770 = vmatprep.mubr.msk.f32.mxu1 %vm393_vm0, %v3589_v59 }
  0x4c   : > { %2888 = vmatprep.mubr.msk.f32.mxu0 %vm393_vm0, %v3592_v60 }
  0x4e   : > { %2771 = vmatmul.mubr.msk.f32.gmra.mrb[14].mxu1 %vm393_vm0, %v3605_v61 }
  0x4f   : > { %2889 = vmatmul.mubr.msk.f32.gmra.mrb[6].mxu0 %vm393_vm0, %v3608_v3  ;;  %2775 = vmatprep.mubr.msk.f32.mxu1 %vm393_vm0, %v3377_v23 }
  0x50   : > { %2891 = vmatprep.mubr.msk.f32.mxu0 %vm393_vm0, %v3612_v10 }
  0x52   : > { %2776 = vmatmul.mubr.msk.f32.vlgmr.msra.gmra.mrb[0].mxu1 %vm393_vm0, %v3382_v24  ;;  %v3754_v24 = vld [vmem:[#allocation2 + $0xd8] sm:$0xff] }
  0x53   : > { %2892 = vmatmul.mubr.msk.f32.gmra.mrb[8].mxu0 %vm393_vm0, %v3625_v8  ;;  %2800 = vmatpush3.msk.msra.mxu1 %vm611_vm2, %v3467_v62  ;;  %v3669_v62 = vsel %vm940_vm4, %v977_v18, %v979_v42 }
  0x54   : > { %2778 = vmatprep.mubr.msk.f32.mxu1 %vm393_vm0, %v3388_v27  ;;  %2894 = vmatprep.mubr.msk.f32.mxu0 %vm393_vm0, %v3630_v19 }
  0x55   : > { %2825 = vmatprep.subr.msk.mxu1 %vm611_vm2, %v508_v25 }
  0x56   : > { %2779 = vmatmul.mubr.msk.f32.gmra.mrb[2].mxu1 %vm393_vm0, %v3394_v29 }
  0x57   : > { %2895 = vmatmul.mubr.msk.f32.gmra.mrb[10].mxu0 %vm393_vm0, %v3648_v28  ;;  %2781 = vmatprep.mubr.msk.f32.mxu1 %vm393_vm0, %v3400_v32 }
  0x58   : > { %2897 = vmatprep.mubr.msk.f32.mxu0 %vm393_vm0, %v3653_v43 }
  0x5a   : > { %2782 = vmatmul.mubr.msk.f32.gmra.mrb[4].mxu1 %vm393_vm0, %v3409_v36 }
  0x5b   : > { %2898 = vmatmul.mubr.msk.f32.gmra.mrb[12].mxu0 %vm393_vm0, %v3669_v62  ;;  %2784 = vmatprep.mubr.msk.f32.mxu1 %vm393_vm0, %v3416_v41 }
  0x5c   : > { %2900 = vmatprep.mubr.msk.f32.mxu0 %vm393_vm0, %v3673_v50 }
  0x5e   : > { %2785 = vmatmul.mubr.msk.f32.gmra.mrb[6].mxu1 %vm393_vm0, %v3422_v45 }
  0x5f   : > { %2901 = vmatmul.mubr.msk.f32.gmra.mrb[14].mxu0 %vm393_vm0, %v3684_v55  ;;  %2787 = vmatprep.mubr.msk.f32.mxu1 %vm393_vm0, %v3431_v51 }
  0x60   : > { %2905 = vmatprep.mubr.msk.f32.mxu0 %vm393_vm0, %v3400_v32 }
  0x62   : > { %2788 = vmatmul.mubr.msk.f32.gmra.mrb[8].mxu1 %vm393_vm0, %v3433_v52 }
  0x63   : > { %2906 = vmatmul.mubr.msk.f32.vlgmr.msra.gmra.mrb[0].mxu0 %vm393_vm0, %v3409_v36  ;;  %2790 = vmatprep.mubr.msk.f32.mxu1 %vm393_vm0, %v3484_v4 }
  0x64   : > { %2930 = vmatpush3.msk.msra.mxu0 %vm611_vm2, %v3543_v35  ;;  %2908 = vmatprep.mubr.msk.f32.mxu0 %vm393_vm0, %v3416_v41  ;;  %v941_v35 = vrot.slane %v3377_v23, 2  ;;  %v945_v23 = vsel %vm940_vm4, %v942_v0, %v944_v2 }
  0x65   : > { %2955 = vmatprep.subr.msk.mxu0 %vm611_vm2, %v513_v57 }
  0x66   : > { %2791 = vmatmul.mubr.msk.f32.gmra.mrb[10].mxu1 %vm393_vm0, %v3486_v5  ;;  %v943_v6 = vsel %vm940_vm4, %v941_v35, %v942_v0 }
  0x67   : > { %2909 = vmatmul.mubr.msk.f32.gmra.mrb[2].mxu0 %vm393_vm0, %v3422_v45  ;;  %2793 = vmatprep.mubr.msk.f32.mxu1 %vm393_vm0, %v3507_v12 }
  0x68   : > { %2911 = vmatprep.mubr.msk.f32.mxu0 %vm393_vm0, %v3431_v51 }
  0x6a   : > { %2794 = vmatmul.mubr.msk.f32.gmra.mrb[12].mxu1 %vm393_vm0, %v3509_v13 }
  0x6b   : > { %2912 = vmatmul.mubr.msk.f32.gmra.mrb[4].mxu0 %vm393_vm0, %v3433_v52  ;;  %2796 = vmatprep.mubr.msk.f32.mxu1 %vm393_vm0, %v3536_v31 }
  0x6c   : > { %2914 = vmatprep.mubr.msk.f32.mxu0 %vm393_vm0, %v3484_v4 }
  0x6e   : > { %2797 = vmatmul.mubr.msk.f32.gmra.mrb[14].mxu1 %vm393_vm0, %v3538_v33 }
  0x6f   : > { %2915 = vmatmul.mubr.msk.f32.gmra.mrb[6].mxu0 %vm393_vm0, %v3486_v5  ;;  %2801 = vmatprep.mubr.msk.f32.mxu1 %vm393_vm0, %v943_v6 }
  0x70   : > { %2917 = vmatprep.mubr.msk.f32.mxu0 %vm393_vm0, %v3507_v12 }
  0x72   : > { %2802 = vmatmul.mubr.msk.f32.vlgmr.msra.gmra.mrb[0].mxu1 %vm393_vm0, %v945_v23 }
  0x73   : > { %2918 = vmatmul.mubr.msk.f32.gmra.mrb[8].mxu0 %vm393_vm0, %v3509_v13  ;;  %2826 = vmatpush3.msk.msra.mxu1 %vm611_vm2, %v508_v25 }
  0x74   : > { %2804 = vmatprep.mubr.msk.f32.mxu1 %vm393_vm0, %v3503_v9  ;;  %2920 = vmatprep.mubr.msk.f32.mxu0 %vm393_vm0, %v3536_v31 }
  0x75   : > { %2981 = vmatprep.subr.msk.mxu1 %vm611_vm2, %v3375_v22 }
  0x76   : > { %2805 = vmatmul.mubr.msk.f32.gmra.mrb[2].mxu1 %vm393_vm0, %v3518_v16 }
  0x77   : > { %2921 = vmatmul.mubr.msk.f32.gmra.mrb[10].mxu0 %vm393_vm0, %v3538_v33  ;;  %2807 = vmatprep.mubr.msk.f32.mxu1 %vm393_vm0, %v3534_v30 }
  0x78   : > { %2923 = vmatprep.mubr.msk.f32.mxu0 %vm393_vm0, %v3632_v20 }
  0x7a   : > { %2808 = vmatmul.mubr.msk.f32.gmra.mrb[4].mxu1 %vm393_vm0, %v3553_v38 }
  0x7b   : > { %2924 = vmatmul.mubr.msk.f32.gmra.mrb[12].mxu0 %vm393_vm0, %v3634_v21  ;;  %2810 = vmatprep.mubr.msk.f32.mxu1 %vm393_vm0, %v3562_v40 }
  0x7c   : > { %2926 = vmatprep.mubr.msk.f32.mxu0 %vm393_vm0, %v3754_v24 }
  0x7e   : > { %2811 = vmatmul.mubr.msk.f32.gmra.mrb[6].mxu1 %vm393_vm0, %v3585_v54 }
  0x7f   : > { %2927 = vmatmul.mubr.msk.f32.gmra.mrb[14].mxu0 %vm393_vm0, %v3764_v34  ;;  %2813 = vmatprep.mubr.msk.f32.mxu1 %vm393_vm0, %v3592_v60 }
  0x80   : > { %2931 = vmatprep.mubr.msk.f32.mxu0 %vm393_vm0, %v3438_v53  ;;  %v1348_v53 = vrot.slane %v3632_v20, 1 }
  0x82   : > { %2814 = vmatmul.mubr.msk.f32.gmra.mrb[8].mxu1 %vm393_vm0, %v3608_v3 }
  0x83   : > { %2932 = vmatmul.mubr.msk.f32.vlgmr.msra.gmra.mrb[0].mxu0 %vm393_vm0, %v3447_v56  ;;  %2816 = vmatprep.mubr.msk.f32.mxu1 %vm393_vm0, %v3612_v10  ;;  %v1349_v56 = vrot.slane %v3634_v21, 1 }
  0x84   : > { %2956 = vmatpush3.msk.msra.mxu0 %vm611_vm2, %v513_v57  ;;  %2934 = vmatprep.mubr.msk.f32.mxu0 %vm393_vm0, %v3454_v58  ;;  %v1865_v58 = vrot.slane %v3754_v24, 1 }
  0x86   : > { %2817 = vmatmul.mubr.msk.f32.gmra.mrb[10].mxu1 %vm393_vm0, %v3625_v8 }
  0x87   : > { %2935 = vmatmul.mubr.msk.f32.gmra.mrb[2].mxu0 %vm393_vm0, %v3474_v63  ;;  %2819 = vmatprep.mubr.msk.f32.mxu1 %vm393_vm0, %v3630_v19  ;;  %v1866_v63 = vrot.slane %v3764_v34, 1 }
  0x88   : > { %2937 = vmatprep.mubr.msk.f32.mxu0 %vm393_vm0, %v3478_v1  ;;  %v504_v1 = vld [vmem:[#allocation2 + $0xe8] sm:$0x3] }
  0x8a   : > { %2820 = vmatmul.mubr.msk.f32.gmra.mrb[12].mxu1 %vm393_vm0, %v3648_v28 }
  0x8b   : > { %2938 = vmatmul.mubr.msk.f32.gmra.mrb[4].mxu0 %vm393_vm0, %v3498_v7  ;;  %2822 = vmatprep.mubr.msk.f32.mxu1 %vm393_vm0, %v3653_v43  ;;  %v1867_v7 = vsel %vm538_vm3, %v1865_v58, %v1866_v63 }
  0x8c   : > { %2940 = vmatprep.mubr.msk.f32.mxu0 %vm393_vm0, %v3531_v26 }
  0x8e   : > { %2823 = vmatmul.mubr.msk.f32.gmra.mrb[14].mxu1 %vm393_vm0, %v3669_v62 }
  0x8f   : > { %2941 = vmatmul.mubr.msk.f32.gmra.mrb[6].mxu0 %vm393_vm0, %v3550_v37  ;;  %2827 = vmatprep.mubr.msk.f32.mxu1 %vm393_vm0, %v3388_v27  ;;  %v1351_v27 = vrot.slane %v3657_v48, 1 }
  0x90   : > { %2943 = vmatprep.mubr.msk.f32.mxu0 %vm393_vm0, %v3559_v39 }
  0x92   : > { %2828 = vmatmul.mubr.msk.f32.vlgmr.msra.gmra.mrb[0].mxu1 %vm393_vm0, %v3394_v29  ;;  %v1350_v29 = vsel %vm538_vm3, %v1348_v53, %v1349_v56 }
  0x93   : > { %2944 = vmatmul.mubr.msk.f32.gmra.mrb[8].mxu0 %vm393_vm0, %v3582_v46  ;;  %2982 = vmatpush3.msk.msra.mxu1 %vm611_vm2, %v3375_v22  ;;  %v1352_v22 = vsel %vm538_vm3, %v1349_v56, %v1351_v27 }
  0x94   : > { %2830 = vmatprep.mubr.msk.f32.mxu1 %vm393_vm0, %v3400_v32  ;;  %2946 = vmatprep.mubr.msk.f32.mxu0 %vm393_vm0, %v3589_v59  ;;  %v1868_v32 = vrot.slane %v504_v1, 1 }
  0x96   : > { %2831 = vmatmul.mubr.msk.f32.gmra.mrb[2].mxu1 %vm393_vm0, %v3409_v36  ;;  %v1869_v36 = vsel %vm538_vm3, %v1866_v63, %v1868_v32 }
  0x97   : > { %2947 = vmatmul.mubr.msk.f32.gmra.mrb[10].mxu0 %vm393_vm0, %v3605_v61  ;;  %2833 = vmatprep.mubr.msk.f32.mxu1 %vm393_vm0, %v3416_v41  ;;  %v2038_v41 = vrot.slane %v3754_v24, 2 }
  0x98   : > { %2949 = vmatprep.mubr.msk.f32.mxu0 %vm393_vm0, %v1350_v29 }
  0x9a   : > { %2834 = vmatmul.mubr.msk.f32.gmra.mrb[4].mxu1 %vm393_vm0, %v3422_v45  ;;  %v2039_v45 = vrot.slane %v3764_v34, 2 }
  0x9b   : > { %2950 = vmatmul.mubr.msk.f32.gmra.mrb[12].mxu0 %vm393_vm0, %v1352_v22  ;;  %2836 = vmatprep.mubr.msk.f32.mxu1 %vm393_vm0, %v3431_v51  ;;  %v2041_v51 = vrot.slane %v504_v1, 2 }
  0x9c   : > { %2952 = vmatprep.mubr.msk.f32.mxu0 %vm393_vm0, %v1867_v7 }
  0x9e   : > { %2837 = vmatmul.mubr.msk.f32.gmra.mrb[6].mxu1 %vm393_vm0, %v3433_v52  ;;  %v2040_v52 = vsel %vm940_vm4, %v2038_v41, %v2039_v45 }
  0x9f   : > { %2953 = vmatmul.mubr.msk.f32.gmra.mrb[14].mxu0 %vm393_vm0, %v1869_v36  ;;  %2839 = vmatprep.mubr.msk.f32.mxu1 %vm393_vm0, %v3484_v4  ;;  %v2042_v4 = vsel %vm940_vm4, %v2039_v45, %v2041_v51 }
  0xa0   : > { %2957 = vmatprep.mubr.msk.f32.mxu0 %vm393_vm0, %v3534_v30 }
  0xa2   : > { %2840 = vmatmul.mubr.msk.f32.gmra.mrb[8].mxu1 %vm393_vm0, %v3486_v5 }
  0xa3   : > { %2958 = vmatmul.mubr.msk.f32.vlgmr.msra.gmra.mrb[0].mxu0 %vm393_vm0, %v3553_v38  ;;  %2842 = vmatprep.mubr.msk.f32.mxu1 %vm393_vm0, %v3507_v12 }
  0xa4   : > { %2960 = vmatprep.mubr.msk.f32.mxu0 %vm393_vm0, %v3562_v40 }
  0xa6   : > { %2843 = vmatmul.mubr.msk.f32.gmra.mrb[10].mxu1 %vm393_vm0, %v3509_v13 }
  0xa7   : > { %2961 = vmatmul.mubr.msk.f32.gmra.mrb[2].mxu0 %vm393_vm0, %v3585_v54  ;;  %2845 = vmatprep.mubr.msk.f32.mxu1 %vm393_vm0, %v3536_v31 }
  0xa8   : > { %2963 = vmatprep.mubr.msk.f32.mxu0 %vm393_vm0, %v3592_v60 }
  0xaa   : > { %2846 = vmatmul.mubr.msk.f32.gmra.mrb[12].mxu1 %vm393_vm0, %v3538_v33 }
  0xab   : > { %2964 = vmatmul.mubr.msk.f32.gmra.mrb[4].mxu0 %vm393_vm0, %v3608_v3  ;;  %2848 = vmatprep.mubr.msk.f32.mxu1 %vm393_vm0, %v3632_v20 }
  0xac   : > { %2966 = vmatprep.mubr.msk.f32.mxu0 %vm393_vm0, %v3612_v10 }
  0xae   : > { %2849 = vmatmul.mubr.msk.f32.gmra.mrb[14].mxu1 %vm393_vm0, %v3634_v21 }
  0xaf   : > { %2967 = vmatmul.mubr.msk.f32.gmra.mrb[6].mxu0 %vm393_vm0, %v3625_v8  ;;  %2865 = vmatprep.mubr.msk.f32.mxu1 %vm393_vm0, %v3531_v26 }
  0xb0   : > { %2969 = vmatprep.mubr.msk.f32.mxu0 %vm393_vm0, %v3630_v19 }
  0xb2   : > { %2866 = vmatmul.mubr.msk.f32.vlgmr.msra.gmra.mrb[8].mxu1 %vm393_vm0, %v3550_v37  ;;  %v3909_v37 = vld [vmem:[%s3978_s4] ss:$0 sm:$0xff] }
  0xb3   : > { %2970 = vmatmul.mubr.msk.f32.gmra.mrb[8].mxu0 %vm393_vm0, %v3648_v28  ;;  %2868 = vmatprep.mubr.msk.f32.mxu1 %vm393_vm0, %v3559_v39 }
  0xb4   : > { %2972 = vmatprep.mubr.msk.f32.mxu0 %vm393_vm0, %v3653_v43 }
  0xb6   : > { %2869 = vmatmul.mubr.msk.f32.gmra.mrb[10].mxu1 %vm393_vm0, %v3582_v46 }
  0xb7   : > { %2973 = vmatmul.mubr.msk.f32.gmra.mrb[10].mxu0 %vm393_vm0, %v3669_v62  ;;  %2871 = vmatprep.mubr.msk.f32.mxu1 %vm393_vm0, %v3589_v59 }
  0xb8   : > { %2975 = vmatprep.mubr.msk.f32.mxu0 %vm393_vm0, %v3673_v50 }
  0xba   : > { %2872 = vmatmul.mubr.msk.f32.gmra.mrb[12].mxu1 %vm393_vm0, %v3605_v61 }
  0xbb   : > { %2976 = vmatmul.mubr.msk.f32.gmra.mrb[12].mxu0 %vm393_vm0, %v3684_v55  ;;  %2874 = vmatprep.mubr.msk.f32.mxu1 %vm393_vm0, %v1350_v29 }
  0xbc   : > { %2978 = vmatprep.mubr.msk.f32.mxu0 %vm393_vm0, %v2040_v52 }
  0xbe   : > { %2875 = vmatmul.mubr.msk.f32.gmra.mrb[14].mxu1 %vm393_vm0, %v1352_v22 }
  0xbf   : > { %2979 = vmatmul.mubr.msk.f32.gmra.mrb[14].mxu0 %vm393_vm0, %v2042_v4 }
 0x165   : > { %v2829_v5 = vpop.f32.mrb[0].mxu1 }
 0x166   : > { %v1252_v9 = vpop.f32.mrb[1].mxu1 }
 0x169   : > { %v2832_v12 = vpop.f32.mrb[2].mxu1 }
 0x16a   : > { %v1262_v13 = vpop.f32.mrb[3].mxu1 }
 0x16d   : > { %v2835_v16 = vpop.f32.mrb[4].mxu1 }
 0x16e   : > { %v1272_v26 = vpop.f32.mrb[5].mxu1 }
 0x171   : > { %v2838_v30 = vpop.f32.mrb[6].mxu1 }
 0x172   : > { %v1282_v31 = vpop.f32.mrb[7].mxu1 }
 0x176   : > { %v2959_v33 = vpop.f32.mrb[0].mxu0 }
 0x177   : > { %v2983_v38 = vadd.f32 %v2959_v33, %v2829_v5  ;;  %v2116_v39 = vpop.f32.mrb[1].mxu0 }
 0x178   : > { %v2984_v40 = vadd.f32 %v2116_v39, %v1252_v9 }
 0x179   : > { %v2219_v46 = vadd.f32 %v2983_v38, %v3909_v37 }
 0x17a   : > { %v2218_v54 = vadd.f32 %v2984_v40, %v3909_v37  ;;  %v2962_v59 = vpop.f32.mrb[2].mxu0 }
 0x17b   : > { %2236 = vst.msk [vmem:[%s3313_s14 + $0x8] sm:$0xff] %vm2234_vm5, %v2219_v46  ;;  %v2985_v60 = vadd.f32 %v2962_v59, %v2832_v12  ;;  %v2126_v61 = vpop.f32.mrb[3].mxu0 }
 0x17c   : > { %2235 = vst.msk [vmem:[%s3313_s14] sm:$0xff] %vm2234_vm5, %v2218_v54  ;;  %v2986_v3 = vadd.f32 %v2126_v61, %v1262_v13 }
 0x17d   : > { %v2221_v10 = vadd.f32 %v2985_v60, %v3909_v37 }
 0x17e   : > { %v2220_v11 = vadd.f32 %v2986_v3, %v3909_v37  ;;  %v2965_v14 = vpop.f32.mrb[4].mxu0 }
 0x17f   : > { %2238 = vst.msk [vmem:[%s3313_s14 + $0x18] sm:$0xff] %vm2234_vm5, %v2221_v10  ;;  %v2987_v8 = vadd.f32 %v2965_v14, %v2835_v16  ;;  %v2136_v15 = vpop.f32.mrb[5].mxu0 }
 0x180   : > { %2237 = vst.msk [vmem:[%s3313_s14 + $0x10] sm:$0xff] %vm2234_vm5, %v2220_v11  ;;  %v2988_v17 = vadd.f32 %v2136_v15, %v1272_v26 }
 0x181   : > { %v2223_v18 = vadd.f32 %v2987_v8, %v3909_v37 }
 0x182   : > { %v2222_v19 = vadd.f32 %v2988_v17, %v3909_v37  ;;  %v2968_v20 = vpop.f32.mrb[6].mxu0 }
 0x183   : > { %2240 = vst.msk [vmem:[%s3313_s14 + $0x28] sm:$0xff] %vm2234_vm5, %v2223_v18  ;;  %v2989_v21 = vadd.f32 %v2968_v20, %v2838_v30  ;;  %v2146_v25 = vpop.f32.mrb[7].mxu0 }
 0x184   : > { %2239 = vst.msk [vmem:[%s3313_s14 + $0x20] sm:$0xff] %vm2234_vm5, %v2222_v19  ;;  %v2990_v28 = vadd.f32 %v2146_v25, %v1282_v31 }
 0x185   : > { %v2225_v42 = vadd.f32 %v2989_v21, %v3909_v37  ;;  %v2867_v44 = vpop.f32.mrb[8].mxu1 }
 0x186   : > { %v2224_v43 = vadd.f32 %v2990_v28, %v3909_v37  ;;  %v2971_v47 = vpop.f32.mrb[8].mxu0  ;;  %v1466_v62 = vpop.f32.mrb[9].mxu1 }
 0x187   : > { %2242 = vst.msk [vmem:[%s3313_s14 + $0x38] sm:$0xff] %vm2234_vm5, %v2225_v42  ;;  %v2991_v48 = vadd.f32 %v2971_v47, %v2867_v44  ;;  %v2156_v49 = vpop.f32.mrb[9].mxu0 }
 0x188   : > { %2241 = vst.msk [vmem:[%s3313_s14 + $0x30] sm:$0xff] %vm2234_vm5, %v2224_v43  ;;  %v2992_v50 = vadd.f32 %v2156_v49, %v1466_v62 }
 0x189   : > { %v2227_v55 = vadd.f32 %v2991_v48, %v3909_v37  ;;  %v2870_v35 = vpop.f32.mrb[10].mxu1 }
 0x18a   : > { %v2226_v57 = vadd.f32 %v2992_v50, %v3909_v37  ;;  %v2974_v0 = vpop.f32.mrb[10].mxu0  ;;  %v1476_v6 = vpop.f32.mrb[11].mxu1 }
 0x18b   : > { %2244 = vst.msk [vmem:[%s3313_s14 + $0x48] sm:$0xff] %vm2234_vm5, %v2227_v55  ;;  %v2993_v2 = vadd.f32 %v2974_v0, %v2870_v35  ;;  %v2166_v23 = vpop.f32.mrb[11].mxu0 }
 0x18c   : > { %2243 = vst.msk [vmem:[%s3313_s14 + $0x40] sm:$0xff] %vm2234_vm5, %v2226_v57  ;;  %v2994_v24 = vadd.f32 %v2166_v23, %v1476_v6 }
 0x18d   : > { %v2229_v34 = vadd.f32 %v2993_v2, %v3909_v37  ;;  %v2873_v56 = vpop.f32.mrb[12].mxu1 }
 0x18e   : > { %v2228_v53 = vadd.f32 %v2994_v24, %v3909_v37  ;;  %v2977_v27 = vpop.f32.mrb[12].mxu0  ;;  %v1486_v63 = vpop.f32.mrb[13].mxu1 }
 0x18f   : > { %2246 = vst.msk [vmem:[%s3313_s14 + $0x58] sm:$0xff] %vm2234_vm5, %v2229_v34  ;;  %v2995_v58 = vadd.f32 %v2977_v27, %v2873_v56  ;;  %v2176_v29 = vpop.f32.mrb[13].mxu0 }
 0x190   : > { %2245 = vst.msk [vmem:[%s3313_s14 + $0x50] sm:$0xff] %vm2234_vm5, %v2228_v53  ;;  %v2996_v1 = vadd.f32 %v2176_v29, %v1486_v63 }
 0x191   : > { %v2231_v22 = vadd.f32 %v2995_v58, %v3909_v37  ;;  %v2876_v7 = vpop.f32.mrb[14].mxu1 }
 0x192   : > { %v2230_v32 = vadd.f32 %v2996_v1, %v3909_v37  ;;  %v2980_v36 = vpop.f32.mrb[14].mxu0  ;;  %v1496_v45 = vpop.f32.mrb[15].mxu1 }
 0x193   : > { %2248 = vst.msk [vmem:[%s3313_s14 + $0x68] sm:$0xff] %vm2234_vm5, %v2231_v22  ;;  %v2997_v41 = vadd.f32 %v2980_v36, %v2876_v7  ;;  %v2186_v51 = vpop.f32.mrb[15].mxu0 }
 0x194   : > { %2247 = vst.msk [vmem:[%s3313_s14 + $0x60] sm:$0xff] %vm2234_vm5, %v2230_v32  ;;  %v2998_v52 = vadd.f32 %v2186_v51, %v1496_v45 }
 0x195   : > { %v2233_v4 = vadd.f32 %v2997_v41, %v3909_v37 }
 0x196   : > { %v2232_v5 = vadd.f32 %v2998_v52, %v3909_v37 }
 0x197   : > { %2250 = vst.msk [vmem:[%s3313_s14 + $0x78] sm:$0xff] %vm2234_vm5, %v2233_v4 }
 0x198   : > { %2249 = vst.msk [vmem:[%s3313_s14 + $0x70] sm:$0xff] %vm2234_vm5, %v2232_v5 }
 0x199 PF: > { %s15_s22 = sadd.s32 1, %s3190_s22   ;;  %s3981_s18 = smov %s3182_s20 }
 0x19a   : > { %p12_p12 = scmp.ge.s32.totalorder %s15_s22, 6   ;;  %s3982_s19 = smov %s3186_s21 }
 0x19b   : > { %s3983_s20 = smov %s3986_s23  ;;  %s3984_s21 = smov %s3990_s24 }
 0x19c   :  { %14 = sbr.rel (!%p12_p12) target bundleno = 3 (0x3), region = 86 }

</bundles_post_ra>
